<compile_context>
chip_gen: v7x
topology: tpu7x:2x2x1
jax: 0.10.0
libtpu: 0.0.40
codegen_flags: <defaults>
</compile_context>

<pallas_src>
import jax
import jax.numpy as jnp
from jax.experimental import pallas as pl
from jax.experimental.pallas import tpu as pltpu

IN_FEATURES = 28 * 28   # 784
HIDDEN = 128
OUT_FEATURES = 1


def _mlp_kernel(x_ref, w1_ref, b1_ref, w2_ref, b2_ref, o_ref):
    # x_ref : (bm, 784)  f32    activation tile (streamed from HBM, cast here)
    # w1_ref: (784, 128) bf16   layer-1 weights (constant index_map -> resident)
    # b1_ref: (1, 128)   f32
    # w2_ref: (1, 128)   f32    layer-2 weights laid out as a lane row
    # b2_ref: (1, 1)     f32
    # o_ref : (bm, 1)    f32
    #
    # In-kernel f32 -> bf16 cast: pure VPU work hidden under the x DMA; gives
    # full MXU bf16 rate without an extra HBM pass over x in the wrapper.
    x_bf16 = x_ref[...].astype(jnp.bfloat16)
    h = jnp.dot(x_bf16, w1_ref[...], preferred_element_type=jnp.float32)
    h = jnp.maximum(h + b1_ref[...], 0.0)              # bias + ReLU on the VPU (f32)
    # 128 -> 1 projection as VPU multiply + lane (XLU) reduction: avoids a
    # wasteful (bm,128)@(128,1) MXU matmul and its per-step push/drain latency.
    y = jnp.sum(h * w2_ref[...], axis=-1, keepdims=True)
    # Output kept (bm, 1): the output stream is ~0.1% of the x stream, so the
    # masked store is off the critical path on all generations.
    o_ref[...] = (y + b2_ref[...]).astype(o_ref.dtype)


def _round_up(n: int, m: int) -> int:
    return ((n + m - 1) // m) * m


def _pick_block_b(batch: int) -> int:
    """Batch-tile size derived from B (no hard-coded 8, no padding needed).

    Target 2048 rows: the f32 x tile is ~6.4 MB (~12.8 MB double-buffered),
    comfortably inside the 32 MiB scoped-VMEM limit on v5e/v6e and under
    v7x's 64 MiB physical VMEM, while amortizing the ~0.35 us/step pipeline
    overhead. For batches larger than the target, size the tile so the grid
    has >= 4 steps: on v7x the 'parallel' batch axis shards across 2 TCs and
    each core then gets >= 2 steps, giving the double-buffered pipeline a
    steady state (DMA overlaps compute) instead of fully exposed prologue DMA.
    """
    target = 2048
    if batch <= target:
        return _round_up(batch, 8)
    return min(target, _round_up(pl.cdiv(batch, 4), 8))


def prepare_params(w1, b1, w2, b2):
    """One-time parameter prep (hoisted out of the per-call path).

    w1 is stored in bf16 (half the HBM bytes, full MXU rate); biases and the
    second-layer weights are pre-reshaped to the 2-D lane layouts the kernel
    expects, so the forward pass launches exactly one op: the pallas_call.
    """
    w1_bf16 = w1.astype(jnp.bfloat16)                                # (784, 128)
    b1_2d = b1.reshape(1, HIDDEN).astype(jnp.float32)                # (1, 128)
    w2_row = w2.reshape(OUT_FEATURES, HIDDEN).astype(jnp.float32)    # (1, 128)
    b2_2d = b2.reshape(1, OUT_FEATURES).astype(jnp.float32)          # (1, 1)
    return w1_bf16, b1_2d, w2_row, b2_2d


def discriminator_wasserstein(x, params, *, block_b=None):
    """x: (B, 1, 28, 28) float32 NCHW -> (B, 1) float32. params from prepare_params."""
    B = x.shape[0]
    x_flat = x.reshape(B, IN_FEATURES)                 # glue: PyTorch .view() (no copy/cast)
    w1_bf16, b1_2d, w2_row, b2_2d = params

    if block_b is None:
        block_b = _pick_block_b(B)
    assert block_b % 8 == 0, "block_b must be a multiple of 8 (sublane tiling)"

    # No padding: a cdiv grid lets the last partial block use Pallas' masked
    # reads/writes. Garbage rows in the padded region only produce garbage
    # output rows, whose stores are masked — valid rows are unaffected.
    grid = (pl.cdiv(B, block_b),)

    cost = pl.CostEstimate(
        flops=2 * B * IN_FEATURES * HIDDEN + 2 * B * HIDDEN,
        transcendentals=0,
        bytes_accessed=(B * IN_FEATURES * 4             # x (f32, single HBM read)
                        + IN_FEATURES * HIDDEN * 2      # w1 (bf16, fetched once)
                        + HIDDEN * 4 * 2 + 4            # b1, w2, b2 (f32)
                        + B * OUT_FEATURES * 4),        # output (f32)
    )

    out = pl.pallas_call(
        _mlp_kernel,
        out_shape=jax.ShapeDtypeStruct((B, OUT_FEATURES), jnp.float32),
        grid_spec=pltpu.PrefetchScalarGridSpec(
            num_scalar_prefetch=0,
            grid=grid,
            in_specs=[
                pl.BlockSpec((block_b, IN_FEATURES), lambda i: (i, 0)),
                # Constant index_maps: weights/biases are DMA'd once and stay
                # resident in VMEM across the whole grid.
                pl.BlockSpec((IN_FEATURES, HIDDEN), lambda i: (0, 0)),
                pl.BlockSpec((1, HIDDEN), lambda i: (0, 0)),
                pl.BlockSpec((1, HIDDEN), lambda i: (0, 0)),
                pl.BlockSpec((1, OUT_FEATURES), lambda i: (0, 0)),
            ],
            out_specs=pl.BlockSpec((block_b, OUT_FEATURES), lambda i: (i, 0)),
        ),
        compiler_params=pltpu.CompilerParams(
            dimension_semantics=("parallel",),   # batch axis shards across TCs (v7x)
            # ~13 MB double-buffered x at block_b=2048 + resident weights:
            # fits the 32 MiB scope on v5e/v6e and respects v7x's 64 MiB VMEM.
            vmem_limit_bytes=32 * 1024 * 1024,
        ),
        cost_estimate=cost,
    )(x_flat, w1_bf16, b1_2d, w2_row, b2_2d)

    return out


def init_params(key):
    """Deterministic PyTorch-default-style init: U(-1/sqrt(fan_in), 1/sqrt(fan_in))."""
    k1, k2, k3, k4 = jax.random.split(key, 4)
    bound1 = 1.0 / jnp.sqrt(float(IN_FEATURES))
    bound2 = 1.0 / jnp.sqrt(float(HIDDEN))
    # weights stored as (in, out): equivalent to PyTorch's (out, in) transposed
    w1 = jax.random.uniform(k1, (IN_FEATURES, HIDDEN), jnp.float32, -bound1, bound1)
    b1 = jax.random.uniform(k2, (HIDDEN,), jnp.float32, -bound1, bound1)
    w2 = jax.random.uniform(k3, (HIDDEN, OUT_FEATURES), jnp.float32, -bound2, bound2)
    b2 = jax.random.uniform(k4, (OUT_FEATURES,), jnp.float32, -bound2, bound2)
    return w1, b1, w2, b2


if __name__ == "__main__":
    key = jax.random.PRNGKey(0)
    kx, kp = jax.random.split(key)

    # Deliberately not a multiple of 8 to exercise the partial-block path.
    B = 20
    x = jax.random.normal(kx, (B, 1, 28, 28), jnp.float32)   # NCHW MNIST-like input
    w1, b1, w2, b2 = init_params(kp)

    # One-time parameter prep (cast/reshape hoisted out of the forward path).
    params = prepare_params(w1, b1, w2, b2)

    # Default (B-derived) tile: single grid step (B=20 -> block_b=24, partial block).
    out = jax.block_until_ready(discriminator_wasserstein(x, params))
    # Small explicit tile: multi-step grid + partial tail block.
    out_tiled = jax.block_until_ready(
        discriminator_wasserstein(x, params, block_b=8))

    # Reference in plain f32 JAX (kernel runs the matmul in bf16 -> loosened tolerance).
    x_flat = x.reshape(B, IN_FEATURES)
    ref = jnp.maximum(x_flat @ w1 + b1, 0.0) @ w2 + b2
    assert out.shape == (B, 1)
    assert out_tiled.shape == (B, 1)
    assert jnp.allclose(out, ref, atol=3e-2, rtol=3e-2), "mismatch vs reference"
    assert jnp.allclose(out_tiled, ref, atol=3e-2, rtol=3e-2), "mismatch vs reference (tiled)"

    print("KERNEL_OK")
</pallas_src>

<mosaic_0001>
module attributes {stable_mosaic.version = 11 : i64} {
  func.func @_mlp_kernel(%arg0: i32, %arg1: memref<24x784xf32, #tpu.memory_space<vmem>>, %arg2: memref<784x128xbf16, #tpu.memory_space<vmem>>, %arg3: memref<1x128xf32, #tpu.memory_space<vmem>>, %arg4: memref<1x128xf32, #tpu.memory_space<vmem>>, %arg5: memref<1x1xf32, #tpu.memory_space<vmem>>, %arg6: memref<24x1xf32, #tpu.memory_space<vmem>>) attributes {dimension_semantics = [#tpu.dimension_semantics<parallel>], iteration_bounds = array<i64: 1>, scalar_prefetch = 0 : i64, scratch_operands = 0 : i64, tpu.core_type = #tpu.core_type<tc>, window_params = [{transform_indices = @transform_0, window_bounds = array<i64: 24, 784>}, {pipeline_mode = #tpu.pipeline_mode<synchronous>, transform_indices = @transform_1, window_bounds = array<i64: 784, 128>}, {pipeline_mode = #tpu.pipeline_mode<synchronous>, transform_indices = @transform_2, window_bounds = array<i64: 1, 128>}, {pipeline_mode = #tpu.pipeline_mode<synchronous>, transform_indices = @transform_3, window_bounds = array<i64: 1, 128>}, {pipeline_mode = #tpu.pipeline_mode<synchronous>, transform_indices = @transform_4, window_bounds = array<i64: 1, 1>}, {transform_indices = @transform_5, window_bounds = array<i64: 24, 1>}]} {
    %c0 = arith.constant 0 : index
    %c0_0 = arith.constant 0 : index
    %0 = vector.load %arg1[%c0, %c0_0] : memref<24x784xf32, #tpu.memory_space<vmem>>, vector<24x784xf32>
    %1 = arith.truncf %0 : vector<24x784xf32> to vector<24x784xbf16>
    %c0_1 = arith.constant 0 : index
    %c0_2 = arith.constant 0 : index
    %2 = vector.load %arg2[%c0_1, %c0_2] : memref<784x128xbf16, #tpu.memory_space<vmem>>, vector<784x128xbf16>
    %cst = arith.constant dense<0.000000e+00> : vector<24x128xf32>
    %3 = tpu.matmul %1, %2, %cst {dimension_numbers = #tpu.dot_dimension_numbers<[1], [0], [0], [1], [0, 0, 1, 1], [], []>} : vector<24x784xbf16>, vector<784x128xbf16>, vector<24x128xf32> -> vector<24x128xf32>
    %c0_3 = arith.constant 0 : index
    %c0_4 = arith.constant 0 : index
    %4 = vector.load %arg3[%c0_3, %c0_4] : memref<1x128xf32, #tpu.memory_space<vmem>>, vector<1x128xf32>
    %5 = vector.broadcast %4 : vector<1x128xf32> to vector<24x128xf32>
    %6 = arith.addf %3, %5 : vector<24x128xf32>
    %cst_5 = arith.constant 0.000000e+00 : f32
    %7 = vector.broadcast %cst_5 : f32 to vector<24x128xf32>
    %8 = arith.maximumf %6, %7 : vector<24x128xf32>
    %c0_6 = arith.constant 0 : index
    %c0_7 = arith.constant 0 : index
    %9 = vector.load %arg4[%c0_6, %c0_7] : memref<1x128xf32, #tpu.memory_space<vmem>>, vector<1x128xf32>
    %10 = vector.broadcast %9 : vector<1x128xf32> to vector<24x128xf32>
    %11 = arith.mulf %8, %10 : vector<24x128xf32>
    %cst_8 = arith.constant dense<0.000000e+00> : vector<24xf32>
    %12 = vector.multi_reduction <add>, %11, %cst_8 [1] : vector<24x128xf32> to vector<24xf32>
    %13 = vector.shape_cast %12 : vector<24xf32> to vector<24x1xf32>
    %c0_9 = arith.constant 0 : index
    %c0_10 = arith.constant 0 : index
    %14 = vector.load %arg5[%c0_9, %c0_10] : memref<1x1xf32, #tpu.memory_space<vmem>>, vector<1x1xf32>
    %15 = vector.broadcast %14 : vector<1x1xf32> to vector<24x1xf32>
    %16 = arith.addf %13, %15 : vector<24x1xf32>
    %c0_11 = arith.constant 0 : index
    %c0_12 = arith.constant 0 : index
    %17 = vector.load %arg6[%c0_11, %c0_12] : memref<24x1xf32, #tpu.memory_space<vmem>>, vector<24x1xf32>
    tpu.vector_store %arg6[%c0_11, %c0_12], %16 {strides = array<i32>} : memref<24x1xf32, #tpu.memory_space<vmem>>, vector<24x1xf32>,
    return
  }
  func.func @transform_0(%arg0: i32) -> (i32, i32) {
    %c0_i32 = arith.constant 0 : i32
    %c0_i32_0 = arith.constant 0 : i32
    return %arg0, %c0_i32 : i32, i32
  }
  func.func @transform_1(%arg0: i32) -> (i32, i32) {
    %c0_i32 = arith.constant 0 : i32
    %c0_i32_0 = arith.constant 0 : i32
    %c0_i32_1 = arith.constant 0 : i32
    return %c0_i32, %c0_i32_0 : i32, i32
  }
  func.func @transform_2(%arg0: i32) -> (i32, i32) {
    %c0_i32 = arith.constant 0 : i32
    %c0_i32_0 = arith.constant 0 : i32
    %c0_i32_1 = arith.constant 0 : i32
    return %c0_i32, %c0_i32_0 : i32, i32
  }
  func.func @transform_3(%arg0: i32) -> (i32, i32) {
    %c0_i32 = arith.constant 0 : i32
    %c0_i32_0 = arith.constant 0 : i32
    %c0_i32_1 = arith.constant 0 : i32
    return %c0_i32, %c0_i32_0 : i32, i32
  }
  func.func @transform_4(%arg0: i32) -> (i32, i32) {
    %c0_i32 = arith.constant 0 : i32
    %c0_i32_0 = arith.constant 0 : i32
    %c0_i32_1 = arith.constant 0 : i32
    return %c0_i32, %c0_i32_0 : i32, i32
  }
  func.func @transform_5(%arg0: i32) -> (i32, i32) {
    %c0_i32 = arith.constant 0 : i32
    %c0_i32_0 = arith.constant 0 : i32
    return %arg0, %c0_i32 : i32, i32
  }
}

</mosaic_0001>

<bundles_post_ra>
// kernel: tpu_custom_call.1
= control target key start
LH: loop header
LB: loop body
LE: loop exit
PB: predicated region body
PF: predicated region fallthrough
CT: control target
= control target key end

     0   :  { %s1051_s0 = inlined_call_operand.hbm [shape: f32[20,784], index: 0, kind: input, shape index: {}]   ;;  %s1052_s1 = inlined_call_operand.hbm [shape: bf16[784,128], index: 1, kind: input, shape index: {}]   ;;  %s1053_s2 = inlined_call_operand.vmem [shape: f32[1,128], index: 2, kind: input, shape index: {}]   ;;  %s1054_s3 = inlined_call_operand.vmem [shape: f32[1,128], index: 3, kind: input, shape index: {}]   ;;  %s1055_s4 = inlined_call_operand.<no memory space> [shape: f32[1,1], index: 4, kind: input, shape index: {}]   ;;  %s1056_s5 = inlined_call_operand.vmem [shape: f32[20,1], index: 5, kind: output, shape index: {}]  }
   0x1   :  { %v10_v0 = vstv %s1055_s4 }
   0x2   :  { %11 = vst [vmem:[#allocation2] sm:$0x1] %v10_v0 }
   0x3   :  { %12 = vsyncpa [#allocation4], 0 }
   0x4   :  { %13 = vsyncpa [#allocation6], 0  ;;  %s973_s20 = smov [#allocation3]   ;;  %s925_s24 = scalar_lea.hbm %s1051_s0, 2688 }
   0x5   :  { %s19_s21 = sshll.u32 %s973_s20, 4  ;;  %p926_p0 = scmp.ne.s32.totalorder %s1051_s0, %s925_s24  ;;  %s20_s21 = int_to_ptr.vmem [resolvable:$true] %s19_s21 }
   0x6   :  { %p929_p1 = scmp.lt.u32.totalorder %s925_s24, %s1051_s0 }
   0x8   :  { %p931_p2 = pnand %p929_p1, %p926_p0 }
   0xa   :  { %934 = shalt.err (!%p931_p2)
}
   0xb   :  { %s935_s4 = scalar_lea.vmem %s20_s21, 2688  ;;  %p940_p4 = scmp.lt.s32.totalorder %s20_s21, %s20_s21 }
   0xc   :  { %p936_p3 = scmp.ne.s32.totalorder %s20_s21, %s935_s4  ;;  %p941_p5 = scmp.lt.s32.totalorder %s935_s4, %s935_s4 }
   0xe   :  { %p942_p6 = por %p941_p5, %p940_p4 }
  0x10   :  { %p943_p7 = pnand %p942_p6, %p936_p3 }
  0x12   :  { %946 = shalt.err (!%p943_p7)
}
  0x13   :  { %s974_s29 = smov 896   ;;  %s975_s30 = smov 56  }
  0x14   :  { %25 = dma.hbm_to_vmem [thread:$0]  %s1051_s0, 2688, %s20_s21, [#allocation4], %s974_s29, %s974_s29, %s975_s30  }
  0x15   :  { %s976_s8 = smov [#allocation5]   ;;  %s947_s12 = scalar_lea.hbm %s1052_s1, 6272 }
  0x16   :  { %s31_s9 = sshll.u32 %s976_s8, 4  ;;  %p948_p8 = scmp.ne.s32.totalorder %s1052_s1, %s947_s12  ;;  %s32_s9 = int_to_ptr.vmem [resolvable:$true] %s31_s9 }
  0x17   :  { %p951_p9 = scmp.lt.u32.totalorder %s947_s12, %s1052_s1 }
  0x19   :  { %p953_p10 = pnand %p951_p9, %p948_p8 }
  0x1b   :  { %956 = shalt.err (!%p953_p10)
}
  0x1c   :  { %s957_s17 = scalar_lea.vmem %s32_s9, 6272  ;;  %p962_p12 = scmp.lt.s32.totalorder %s32_s9, %s32_s9 }
  0x1d   :  { %p958_p11 = scmp.ne.s32.totalorder %s32_s9, %s957_s17  ;;  %p963_p13 = scmp.lt.s32.totalorder %s957_s17, %s957_s17 }
  0x1f   :  { %p964_p0 = por %p963_p13, %p962_p12 }
  0x21   :  { %p965_p1 = pnand %p964_p0, %p958_p11 }
  0x23   :  { %968 = shalt.err (!%p965_p1)
}
  0x24   :  { %s977_s0 = smov 64   ;;  %s978_s18 = smov 4  }
  0x25   :  { %37 = dma.hbm_to_vmem [thread:$0]  %s1052_s1, 6272, %s32_s9, [#allocation6], %s977_s0, %s977_s0, %s978_s18  }
  0x26   :  { %969 = dma.done.wait [#allocation4], 2688  }
  0x27   :  { %970 = vsyncadd [#allocation4], 4294964608 }
  0x28   :  { %971 = dma.done.wait [#allocation6], 6272  }
  0x29   :  { %972 = vsyncadd [#allocation6], 4294961024  ;;  %v876_v1 = vld [vmem:[#allocation5 + $0x40] sm:$0xff]   ;;  %v880_v5 = vld [vmem:[#allocation5 + $0x48] sm:$0xff]   ;;  %vm485_vm0 = vcmask 130048   ;;  %vm713_vm1 = vcmask 7168  }
  0x2a   :  { %v877_v2 = vld [vmem:[#allocation5] sm:$0xff]   ;;  %777 = vmatprep.subr.bf16.mxu0 %v876_v1  ;;  %v881_v6 = vld [vmem:[#allocation5 + $0x8] sm:$0xff]   ;;  %v884_v9 = vld [vmem:[#allocation5 + $0x50] sm:$0xff]  }
  0x2b   :  { %v878_v3 = vld [vmem:[#allocation5 + $0xc0] sm:$0xff]   ;;  %778 = vmatpush3.bf16.msra.mxu0 %v877_v2  ;;  %v882_v7 = vld [vmem:[#allocation5 + $0xc8] sm:$0xff]   ;;  %v885_v10 = vld [vmem:[#allocation5 + $0x10] sm:$0xff]  }
  0x2c   :  { %v879_v4 = vld [vmem:[#allocation5 + $0x80] sm:$0xff]   ;;  %805 = vmatprep.subr.bf16.mxu1 %v878_v3  ;;  %779 = vmatprep.subr.bf16.mxu0 %v880_v5  ;;  %v883_v8 = vld [vmem:[#allocation5 + $0x88] sm:$0xff]   ;;  %v886_v11 = vld [vmem:[#allocation5 + $0xd0] sm:$0xff]  }
  0x2d   :  { %806 = vmatpush3.bf16.msra.mxu1 %v879_v4  ;;  %v887_v12 = vld [vmem:[#allocation5 + $0x90] sm:$0xff]   ;;  %v888_v13 = vld [vmem:[#allocation5 + $0x58] sm:$0xff]   ;;  %v892_v17 = vld [vmem:[#allocation5 + $0x60] sm:$0xff]  }
  0x2e   :  { %807 = vmatprep.subr.bf16.mxu1 %v882_v7  ;;  %v889_v14 = vld [vmem:[#allocation5 + $0x18] sm:$0xff]   ;;  %v893_v18 = vld [vmem:[#allocation5 + $0x20] sm:$0xff]   ;;  %v896_v21 = vld [vmem:[#allocation5 + $0x68] sm:$0xff]  }
  0x2f   :  { %780 = vmatpush3.bf16.msra.mxu0 %v881_v6  ;;  %v890_v15 = vld [vmem:[#allocation5 + $0xd8] sm:$0xff]   ;;  %v894_v19 = vld [vmem:[#allocation5 + $0xe0] sm:$0xff]   ;;  %v897_v22 = vld [vmem:[#allocation5 + $0x28] sm:$0xff]  }
  0x30   :  { %781 = vmatprep.subr.bf16.mxu0 %v884_v9  ;;  %v891_v16 = vld [vmem:[#allocation5 + $0x98] sm:$0xff]   ;;  %v895_v20 = vld [vmem:[#allocation5 + $0xa0] sm:$0xff]   ;;  %v898_v23 = vld [vmem:[#allocation5 + $0xe8] sm:$0xff]  }
  0x31   :  { %808 = vmatpush3.bf16.msra.mxu1 %v883_v8  ;;  %v899_v24 = vld [vmem:[#allocation5 + $0xa8] sm:$0xff]   ;;  %v900_v25 = vld [vmem:[#allocation5 + $0x70] sm:$0xff]   ;;  %v904_v29 = vld [vmem:[#allocation5 + $0x78] sm:$0xff]  }
  0x32   :  { %809 = vmatprep.subr.bf16.mxu1 %v886_v11  ;;  %v901_v26 = vld [vmem:[#allocation5 + $0x30] sm:$0xff]   ;;  %v905_v30 = vld [vmem:[#allocation5 + $0x38] sm:$0xff]   ;;  %v52_v32 = vld [vmem:[#allocation3 + $0x8] sm:$0xff] }
  0x33   :  { %782 = vmatpush3.bf16.msra.mxu0 %v885_v10  ;;  %v902_v27 = vld [vmem:[#allocation5 + $0xf0] sm:$0xff]   ;;  %v906_v31 = vld [vmem:[#allocation5 + $0xf8] sm:$0xff]   ;;  %v908_v39 = vld [vmem:[#allocation5 + $0x140] sm:$0xff]  }
  0x34   :  { %783 = vmatprep.subr.bf16.mxu0 %v888_v13  ;;  %v903_v28 = vld [vmem:[#allocation5 + $0xb0] sm:$0xff]   ;;  %v59_v33 = vld [vmem:[#allocation3 + $0x40] sm:$0xff]  ;;  %v61_v41 = vld [vmem:[#allocation3 + $0x50] sm:$0xff] }
  0x35   :  { %810 = vmatpush3.bf16.msra.mxu1 %v887_v12  ;;  %v73_v34 = vpack.c.bf16 %v59_v33, %v52_v32  ;;  %v907_v35 = vld [vmem:[#allocation5 + $0xb8] sm:$0xff]   ;;  %v58_v37 = vld [vmem:[#allocation3 + $0x38] sm:$0xff]  ;;  %v909_v43 = vld [vmem:[#allocation5 + $0x100] sm:$0xff]  }
  0x36   :  { %811 = vmatprep.subr.bf16.mxu1 %v890_v15  ;;  %v51_v36 = vld [vmem:[#allocation3] sm:$0xff]  ;;  %v54_v40 = vld [vmem:[#allocation3 + $0x18] sm:$0xff]  ;;  %v53_v44 = vld [vmem:[#allocation3 + $0x10] sm:$0xff] }
  0x37   :  { %784 = vmatpush3.bf16.msra.mxu0 %v889_v14  ;;  %524 = vmatprep.mubr.bf16.mxu0 %v73_v34  ;;  %v72_v38 = vpack.c.bf16 %v58_v37, %v51_v36  ;;  %v75_v42 = vpack.c.bf16 %v61_v41, %v54_v40  ;;  %v60_v45 = vld [vmem:[#allocation3 + $0x48] sm:$0xff]  ;;  %v910_v47 = vld [vmem:[#allocation5 + $0x148] sm:$0xff]   ;;  %v912_v49 = vld [vmem:[#allocation5 + $0x150] sm:$0xff]  }
  0x38   :  { %785 = vmatprep.subr.bf16.mxu0 %v892_v17  ;;  %v74_v46 = vpack.c.bf16 %v60_v45, %v53_v44  ;;  %v911_v48 = vld [vmem:[#allocation5 + $0x108] sm:$0xff]   ;;  %v913_v50 = vld [vmem:[#allocation5 + $0x110] sm:$0xff]   ;;  %v914_v51 = vld [vmem:[#allocation5 + $0x158] sm:$0xff]  }
  0x39   :  { %812 = vmatpush3.bf16.msra.mxu1 %v891_v16  ;;  %572 = vmatprep.mubr.bf16.mxu1 %v75_v42  ;;  %v915_v52 = vld [vmem:[#allocation5 + $0x118] sm:$0xff]   ;;  %v66_v53 = vld [vmem:[#allocation3 + $0x78] sm:$0xff]  ;;  %v916_v54 = vld [vmem:[#allocation5 + $0x160] sm:$0xff]  }
  0x3a   :  { %813 = vmatprep.subr.bf16.mxu1 %v894_v19  ;;  %v80_v55 = vpack.c.bf16 %v66_v53, %v66_v53  ;;  %v65_v56 = vld [vmem:[#allocation3 + $0x70] sm:$0xff]  ;;  %v920_v58 = vld [vmem:[#allocation5 + $0x180] sm:$0xff]   ;;  %v67_v62 = vld [vmem:[#allocation3 + $0x80] sm:$0xff] }
  0x3b   :  { %786 = vmatpush3.bf16.msra.mxu0 %v893_v18  ;;  %v79_v57 = vpack.c.bf16 %v65_v56, %v65_v56  ;;  %v68_v59 = vld [vmem:[#allocation3 + $0x88] sm:$0xff]  ;;  %v918_v63 = vld [vmem:[#allocation5 + $0x168] sm:$0xff]   ;;  %v81_v0 = vpack.c.bf16 %v67_v62, %v67_v62  ;;  %v63_v3 = vld [vmem:[#allocation3 + $0x60] sm:$0xff] }
  0x3c   :  { %787 = vmatprep.subr.bf16.mxu0 %v896_v21  ;;  %v917_v60 = vld [vmem:[#allocation5 + $0x120] sm:$0xff]   ;;  %v82_v61 = vpack.c.bf16 %v68_v59, %v68_v59  ;;  %v919_v1 = vld [vmem:[#allocation5 + $0x128] sm:$0xff]   ;;  %v921_v4 = vld [vmem:[#allocation5 + $0x170] sm:$0xff]  }
  0x3d   :  { %814 = vmatpush3.bf16.msra.mxu1 %v895_v20  ;;  %v56_v2 = vld [vmem:[#allocation3 + $0x28] sm:$0xff]  ;;  %v57_v6 = vld [vmem:[#allocation3 + $0x30] sm:$0xff]  ;;  %v71_v9 = vld [vmem:[#allocation3 + $0xa0] sm:$0xff] }
  0x3e   :  { %815 = vmatprep.subr.bf16.mxu1 %v898_v23  ;;  %v77_v5 = vpack.c.bf16 %v63_v3, %v56_v2  ;;  %v64_v7 = vld [vmem:[#allocation3 + $0x68] sm:$0xff]  ;;  %v922_v10 = vld [vmem:[#allocation5 + $0x130] sm:$0xff]   ;;  %v85_v11 = vpack.c.bf16 %v71_v9, %v71_v9  ;;  %v923_v12 = vld [vmem:[#allocation5 + $0x178] sm:$0xff]  }
  0x3f   :  { %788 = vmatpush3.bf16.msra.mxu0 %v897_v22  ;;  %v78_v8 = vpack.c.bf16 %v64_v7, %v57_v6  ;;  %v924_v13 = vld [vmem:[#allocation5 + $0x138] sm:$0xff]   ;;  %v62_v15 = vld [vmem:[#allocation3 + $0x58] sm:$0xff]  ;;  %v69_v19 = vld [vmem:[#allocation3 + $0x90] sm:$0xff] }
  0x40   :  { %789 = vmatprep.subr.bf16.mxu0 %v900_v25  ;;  %v55_v14 = vld [vmem:[#allocation3 + $0x20] sm:$0xff]  ;;  %v70_v16 = vld [vmem:[#allocation3 + $0x98] sm:$0xff]  ;;  %v83_v20 = vpack.c.bf16 %v69_v19, %v69_v19 }
  0x41   :  { %816 = vmatpush3.bf16.msra.mxu1 %v899_v24  ;;  %v76_v17 = vpack.c.bf16 %v62_v15, %v55_v14  ;;  %v84_v18 = vpack.c.bf16 %v70_v16, %v70_v16  ;;  %v723_v22 = vld [vmem:[%s1053_s2] ss:$0 sm:$0xff] }
  0x42   :  { %817 = vmatprep.subr.bf16.mxu1 %v902_v27  ;;  %v776_v14 = vld [vmem:[#allocation2] ss:$0 sm:$0xff] }
  0x43   :  { %790 = vmatpush3.bf16.msra.mxu0 %v901_v26 }
  0x44   :  { %791 = vmatprep.subr.bf16.mxu0 %v904_v29 }
  0x45   :  { %818 = vmatpush3.bf16.msra.mxu1 %v903_v28 }
  0x46   :  { %819 = vmatprep.subr.bf16.mxu1 %v906_v31 }
  0x47   :  { %792 = vmatpush3.bf16.msra.mxu0 %v905_v30 }
  0x48   :  { %833 = vmatprep.subr.bf16.mxu0 %v908_v39 }
  0x49   :  { %820 = vmatpush3.bf16.msra.mxu1 %v907_v35 }
  0x4a   :  { %525 = vmatmul.mubr.bf16.vlgmr.msra.gmra.mrb[0].mxu0 %v72_v38  ;;  %864 = vmatprep.subr.bf16.mxu1 %v920_v58 }
  0x4b   :  { %834 = vmatpush3.bf16.msra.mxu0 %v909_v43  ;;  %532 = vmatprep.mubr.bf16.mxu0 %v80_v55 }
  0x4c   :  { %573 = vmatmul.mubr.bf16.vlgmr.msra.gmra.mrb[0].mxu1 %v74_v46  ;;  %835 = vmatprep.subr.bf16.mxu0 %v910_v47 }
  0x4d   :  { %580 = vmatprep.mubr.bf16.mxu1 %v82_v61  ;;  %865 = vmatpush3.bf16.msra.mxu1 %v920_v58 }
  0x4f   :  { %836 = vmatpush3.bf16.msra.mxu0 %v911_v48 }
  0x50   :  { %837 = vmatprep.subr.bf16.mxu0 %v912_v49 }
  0x52   :  { %533 = vmatmul.mubr.bf16.gmra.mrb[4].mxu0 %v79_v57 }
  0x53   :  { %838 = vmatpush3.bf16.msra.mxu0 %v913_v50  ;;  %620 = vmatprep.mubr.bf16.mxu0 %v77_v5 }
  0x54   :  { %839 = vmatprep.subr.bf16.mxu0 %v914_v51  ;;  %581 = vmatmul.mubr.bf16.gmra.mrb[4].mxu1 %v81_v0 }
  0x55   :  { %866 = vmatprep.mubr.msk.bf16.mxu1 %vm485_vm0, %v78_v8 }
  0x57   :  { %840 = vmatpush3.bf16.msra.mxu0 %v915_v52 }
  0x58   :  { %841 = vmatprep.subr.bf16.mxu0 %v916_v54 }
  0x5b   :  { %842 = vmatpush3.bf16.msra.mxu0 %v917_v60 }
  0x5c   :  { %843 = vmatprep.subr.bf16.mxu0 %v918_v63  ;;  %867 = vmatmul.mubr.msk.bf16.vlgmr.msra.gmra.mrb[8].mxu1 %vm485_vm0, %v85_v11  ;;  %v775_v63 = vld [vmem:[%s1054_s3] ss:$0 sm:$0xff] }
  0x5f   :  { %844 = vmatpush3.bf16.msra.mxu0 %v919_v1 }
  0x60   :  { %845 = vmatprep.subr.bf16.mxu0 %v921_v4 }
  0x63   :  { %846 = vmatpush3.bf16.msra.mxu0 %v922_v10 }
  0x64   :  { %847 = vmatprep.subr.bf16.mxu0 %v923_v12 }
  0x67   :  { %848 = vmatpush3.bf16.msra.mxu0 %v924_v13 }
  0x6a   :  { %621 = vmatmul.mubr.bf16.vlgmr.msra.gmra.mrb[8].mxu0 %v76_v17 }
  0x6b   :  { %628 = vmatprep.mubr.bf16.mxu0 %v84_v18 }
  0x72   :  { %629 = vmatmul.mubr.bf16.gmra.mrb[12].mxu0 %v83_v20 }
 0x11d   :  { %v793_v21 = vpop.f32.mrb[0].mxu0 }
 0x11e   :  { %v794_v23 = vpop.f32.mrb[1].mxu0 }
 0x11f   :  { %v795_v24 = vadd.f32 %v794_v23, %v793_v21  ;;  %v796_v25 = vpop.f32.mrb[2].mxu0  ;;  %v821_v26 = vpop.f32.mrb[0].mxu1 }
 0x120   :  { %v797_v27 = vpop.f32.mrb[3].mxu0  ;;  %v822_v30 = vpop.f32.mrb[1].mxu1 }
 0x121   :  { %v527_v28 = vadd.f32 %v795_v24, %v723_v22  ;;  %v798_v29 = vadd.f32 %v797_v27, %v796_v25  ;;  %v823_v31 = vadd.f32 %v822_v30, %v821_v26  ;;  %v824_v32 = vpop.f32.mrb[2].mxu1 }
 0x122   :  { %v825_v34 = vpop.f32.mrb[3].mxu1 }
 0x123   :  { %v530_v33 = vadd.f32 %v798_v29, %v723_v22  ;;  %v575_v35 = vadd.f32 %v823_v31, %v527_v28  ;;  %v826_v36 = vadd.f32 %v825_v34, %v824_v32 }
 0x125   :  { %v578_v37 = vadd.f32 %v826_v36, %v530_v33  ;;  %v799_v38 = vpop.f32.mrb[4].mxu0 }
 0x126   :  { %v800_v39 = vpop.f32.mrb[5].mxu0 }
 0x127   :  { %v801_v40 = vadd.f32 %v800_v39, %v799_v38  ;;  %v802_v41 = vpop.f32.mrb[6].mxu0  ;;  %v827_v43 = vpop.f32.mrb[4].mxu1 }
 0x128   :  { %v803_v42 = vpop.f32.mrb[7].mxu0  ;;  %v828_v45 = vpop.f32.mrb[5].mxu1 }
 0x129   :  { %v535_v44 = vadd.f32 %v801_v40, %v723_v22  ;;  %v829_v46 = vadd.f32 %v828_v45, %v827_v43  ;;  %v830_v47 = vpop.f32.mrb[6].mxu1 }
 0x12a   :  { %v831_v48 = vpop.f32.mrb[7].mxu1 }
 0x12b   :  { %v583_v49 = vadd.f32 %v829_v46, %v535_v44 }
 0x12f   :  { %v868_v50 = vpop.f32.mrb[8].mxu1 }
 0x130   :  { %v670_v51 = vpop.f32.mrb[9].mxu1 }
 0x131   :  { %v869_v52 = vpop.f32.mrb[10].mxu1 }
 0x132   :  { %v673_v53 = vpop.f32.mrb[11].mxu1 }
 0x13d   :  { %v849_v54 = vpop.f32.mrb[8].mxu0 }
 0x13e   :  { %v850_v55 = vpop.f32.mrb[9].mxu0 }
 0x13f   :  { %v851_v56 = vadd.f32 %v850_v55, %v849_v54  ;;  %v852_v57 = vpop.f32.mrb[10].mxu0 }
 0x140   :  { %v853_v58 = vpop.f32.mrb[11].mxu0 }
 0x141   :  { %v854_v59 = vadd.f32 %v853_v58, %v852_v57  ;;  %v623_v60 = vadd.f32 %v851_v56, %v575_v35 }
 0x143   :  { %v671_v61 = vadd.f32 %v670_v51, %v623_v60  ;;  %v626_v62 = vadd.f32 %v854_v59, %v578_v37 }
 0x145   :  { %v684_v0 = vmax.f32 %v671_v61, 0.0  ;;  %v674_v1 = vadd.f32 %v673_v53, %v626_v62  ;;  %v855_v2 = vpop.f32.mrb[12].mxu0 }
 0x146   :  { %v856_v3 = vpop.f32.mrb[13].mxu0 }
 0x147   :  { %v685_v4 = vmax.f32 %v674_v1, 0.0  ;;  %v857_v5 = vadd.f32 %v856_v3, %v855_v2  ;;  %v858_v6 = vpop.f32.mrb[14].mxu0  ;;  %v694_v7 = vmul.f32 %v775_v63, %v684_v0 }
 0x148   :  { %v859_v8 = vpop.f32.mrb[15].mxu0 }
 0x149   :  { %v631_v9 = vadd.f32 %v857_v5, %v583_v49  ;;  %697 = vadd.xlane.f32.xlu0 %v694_v7  ;;  %v695_v10 = vmul.f32 %v775_v63, %v685_v4 }
 0x14b   :  { %v679_v11 = vadd.f32 %v868_v50, %v631_v9 }
 0x14d   :  { %699 = vadd.xlane.f32.xlu0 %v695_v10  ;;  %v686_v12 = vmax.f32 %v679_v11, 0.0 }
 0x14f   :  { %v696_v13 = vmul.f32 %v775_v63, %v686_v12 }
 0x151   :  { %701 = vadd.xlane.f32.xlu1 %v696_v13 }
 0x1d6   :  { %v698_v15 = vpop.xlane.xlu0 %697 }
 0x1d7   :  { %v710_v16 = vadd.f32 %v776_v14, %v698_v15 }
 0x1d9   :  { %714 = vst.msk [vmem:[%s1056_s5] sm:$0xff] %vm713_vm1, %v710_v16 }
 0x1da   :  { %v700_v17 = vpop.xlane.xlu0 %699 }
 0x1db   :  { %v711_v18 = vadd.f32 %v776_v14, %v700_v17 }
 0x1dd   :  { %715 = vst.msk [vmem:[%s1056_s5 + $0x8] sm:$0xff] %vm713_vm1, %v711_v18 }
 0x1de   :  { %v702_v19 = vpop.xlane.xlu1 %701 }
 0x1df   :  { %v712_v20 = vadd.f32 %v776_v14, %v702_v19 }
 0x1e1   :  { %716 = vst.msk [vmem:[%s1056_s5 + $0x10] sm:$0xff] %vm713_vm1, %v712_v20 }
 0x1e2   :  { %721 = vsyncpa [#allocation4], 1 }
 0x1e3   :  { %722 = vsyncpa [#allocation6], 1 }

</bundles_post_ra>
